<compile_context>
chip_gen: v6e
topology: v6e:2x2x1
jax: 0.10.0
libtpu: 0.0.40
codegen_flags: <defaults>
</compile_context>

<pallas_src>
import math
import functools

import jax
import jax.numpy as jnp
from jax.experimental import pallas as pl
from jax.experimental.pallas import tpu as pltpu


_VMEM_LIMIT = 48 * 1024 * 1024  # stays under v7x's 64 MiB physical VMEM


# ----------------------------- in-kernel helpers -----------------------------

def _layernorm(x, w, b, eps=1e-5):
    mu = jnp.mean(x, axis=-1, keepdims=True)
    var = jnp.mean((x - mu) ** 2, axis=-1, keepdims=True)
    return (x - mu) * jax.lax.rsqrt(var + eps) * w + b


def _erf(x):
    # Abramowitz & Stegun 7.1.26 polynomial erf (max abs error ~1.5e-7).
    # Uses only exp / mul / add / select so it is guaranteed to lower in
    # Mosaic (avoids relying on a lax.erf lowering).
    a1, a2, a3, a4, a5 = (0.254829592, -0.284496736, 1.421413741,
                          -1.453152027, 1.061405429)
    p = 0.3275911
    sgn = jnp.where(x >= 0.0, 1.0, -1.0)
    ax = jnp.abs(x)
    t = 1.0 / (1.0 + p * ax)
    poly = ((((a5 * t + a4) * t + a3) * t + a2) * t + a1) * t
    y = 1.0 - poly * jnp.exp(-ax * ax)
    return sgn * y


def _gelu_exact(x):
    # Matches torch.nn.functional.gelu default (exact erf formulation).
    return 0.5 * x * (1.0 + _erf(x * 0.7071067811865476))


def _pick_tile(n, candidates):
    for c in candidates:
        if c <= n and n % c == 0:
            return c
    return n


# ------------------------------- Pallas kernels -------------------------------

def _block_kernel(n_head,
                  x_ref, bias_ref,
                  ln1w_ref, ln1b_ref,
                  wqkv_ref, bqkv_ref,
                  wo_ref, bo_ref,
                  ln2w_ref, ln2b_ref,
                  w1_ref, b1_ref, w2_ref, b2_ref,
                  out_ref):
    x = x_ref[0]                                  # (T, C) f32, one batch element
    T, C = x.shape
    H = n_head
    hd = C // H
    scale = 1.0 / math.sqrt(hd)

    # ---- ln1 + fused-QKV causal self-attention (heads batched) ----
    h = _layernorm(x, ln1w_ref[...], ln1b_ref[...])                     # (T, C) f32
    qkv = (jnp.dot(h.astype(jnp.bfloat16), wqkv_ref[...],
                   preferred_element_type=jnp.float32)
           + bqkv_ref[...])                                             # (T, 3C) f32

    q = qkv[:, :C] * scale
    k = qkv[:, C:2 * C]
    v = qkv[:, 2 * C:]
    qh = jnp.transpose(q.reshape(T, H, hd), (1, 0, 2)).astype(jnp.bfloat16)  # (H,T,hd)
    kh = jnp.transpose(k.reshape(T, H, hd), (1, 0, 2)).astype(jnp.bfloat16)
    vh = jnp.transpose(v.reshape(T, H, hd), (1, 0, 2)).astype(jnp.bfloat16)

    att = jnp.einsum('htd,hsd->hts', qh, kh,
                     preferred_element_type=jnp.float32)                # (H, T, T) f32
    att = att + bias_ref[...]                      # additive causal bias (0 / -1e30)
    att = att - jnp.max(att, axis=-1, keepdims=True)
    p = jnp.exp(att)
    p = p * pl.reciprocal(jnp.sum(p, axis=-1, keepdims=True), approx=True)

    y = jnp.einsum('hts,hsd->htd', p.astype(jnp.bfloat16), vh,
                   preferred_element_type=jnp.float32)                  # (H, T, hd)
    y = jnp.transpose(y, (1, 0, 2)).reshape(T, C)

    y = (jnp.dot(y.astype(jnp.bfloat16), wo_ref[...],
                 preferred_element_type=jnp.float32) + bo_ref[...])
    x = x + y                                      # residual 1

    # ---- ln2 + MLP ----
    h = _layernorm(x, ln2w_ref[...], ln2b_ref[...])
    m = (jnp.dot(h.astype(jnp.bfloat16), w1_ref[...],
                 preferred_element_type=jnp.float32) + b1_ref[...])
    m = _gelu_exact(m)                             # exact erf GELU (matches F.gelu)
    m = (jnp.dot(m.astype(jnp.bfloat16), w2_ref[...],
                 preferred_element_type=jnp.float32) + b2_ref[...])
    out_ref[0] = x + m                             # residual 2


def _head_kernel(x_ref, lnw_ref, lnb_ref, wh_ref, out_ref, h_scratch):
    # grid = (row_tiles, vocab_tiles); vocab axis is inner, so the LayerNorm
    # of the current row tile is computed once (j == 0) and cached in VMEM.
    j = pl.program_id(1)

    @pl.when(j == 0)
    def _():
        h = _layernorm(x_ref[...], lnw_ref[...], lnb_ref[...])
        h_scratch[...] = h.astype(jnp.bfloat16)

    out_ref[...] = jnp.dot(h_scratch[...], wh_ref[...],
                           preferred_element_type=jnp.float32)


# ------------------------------ pallas_call glue ------------------------------

def run_block(x, causal_bias, layer_params, n_head):
    B, T, C = x.shape
    args = (x, causal_bias) + tuple(layer_params)

    def full_spec(a):
        rank = a.ndim
        return pl.BlockSpec(a.shape, lambda b, _r=rank: (0,) * _r)

    in_specs = [pl.BlockSpec((1, T, C), lambda b: (b, 0, 0))]
    in_specs += [full_spec(a) for a in args[1:]]

    return pl.pallas_call(
        functools.partial(_block_kernel, n_head),
        grid=(B,),
        out_shape=jax.ShapeDtypeStruct(x.shape, x.dtype),
        in_specs=in_specs,
        out_specs=pl.BlockSpec((1, T, C), lambda b: (b, 0, 0)),
        input_output_aliases={0: 0},          # residual stream updated in place
        compiler_params=pltpu.CompilerParams(
            dimension_semantics=("parallel",),
            vmem_limit_bytes=_VMEM_LIMIT),
    )(*args)


def run_head(x, ln_f_w, ln_f_b, head_w):
    B, T, C = x.shape
    V = head_w.shape[1]
    BT = B * T
    x2d = x.reshape(BT, C)

    TM = _pick_tile(BT, (512, 256, 128, 64, 32, 16, 8))
    TV = _pick_tile(V, (2048, 1024, 512, 256, 128))
    grid = (BT // TM, V // TV)

    logits = pl.pallas_call(
        _head_kernel,
        grid=grid,
        out_shape=jax.ShapeDtypeStruct((BT, V), jnp.float32),
        in_specs=[
            pl.BlockSpec((TM, C), lambda i, j: (i, 0)),
            pl.BlockSpec((1, C), lambda i, j: (0, 0)),
            pl.BlockSpec((1, C), lambda i, j: (0, 0)),
            pl.BlockSpec((C, TV), lambda i, j: (0, j)),
        ],
        out_specs=pl.BlockSpec((TM, TV), lambda i, j: (i, j)),
        scratch_shapes=[pltpu.VMEM((TM, C), jnp.bfloat16)],
        compiler_params=pltpu.CompilerParams(
            dimension_semantics=("parallel", "arbitrary"),
            vmem_limit_bytes=_VMEM_LIMIT),
    )(x2d, ln_f_w, ln_f_b, head_w)
    return logits.reshape(B, T, V)


# ------------------------------ parameter setup -------------------------------

def init_params(key, vocab_size, block_size, n_layer, n_head, n_embd):
    std = 0.02
    C = n_embd
    n_per_layer = 6  # wq, wk, wv, wo, w1, w2
    keys = jax.random.split(key, 2 + n_layer * n_per_layer)

    params = {
        'tok_emb': std * jax.random.normal(keys[0], (vocab_size, C), jnp.float32),
        # nn.Parameter(torch.zeros(...)) — untouched by _init_weights.
        'pos_emb': jnp.zeros((1, block_size, C), jnp.float32),
        'ln_f_w': jnp.ones((1, C), jnp.float32),
        'ln_f_b': jnp.zeros((1, C), jnp.float32),
        # head: Linear(C, vocab, bias=False); stored pre-transposed, bf16.
        'head_w': (std * jax.random.normal(keys[1], (C, vocab_size), jnp.float32)
                   ).astype(jnp.bfloat16),
        'blocks': [],
    }

    kidx = 2
    for _ in range(n_layer):
        lk = keys[kidx:kidx + n_per_layer]
        kidx += n_per_layer
        wq = std * jax.random.normal(lk[0], (C, C), jnp.float32)
        wk = std * jax.random.normal(lk[1], (C, C), jnp.float32)
        wv = std * jax.random.normal(lk[2], (C, C), jnp.float32)
        layer = (
            jnp.ones((1, C), jnp.float32),                                # ln1 w
            jnp.zeros((1, C), jnp.float32),                               # ln1 b
            jnp.concatenate([wq, wk, wv], axis=1).astype(jnp.bfloat16),   # wqkv (C,3C)
            jnp.zeros((1, 3 * C), jnp.float32),                           # bqkv
            (std * jax.random.normal(lk[3], (C, C), jnp.float32)
             ).astype(jnp.bfloat16),                                      # wo
            jnp.zeros((1, C), jnp.float32),                               # bo
            jnp.ones((1, C), jnp.float32),                                # ln2 w
            jnp.zeros((1, C), jnp.float32),                               # ln2 b
            (std * jax.random.normal(lk[4], (C, 4 * C), jnp.float32)
             ).astype(jnp.bfloat16),                                      # w1
            jnp.zeros((1, 4 * C), jnp.float32),                           # b1
            (std * jax.random.normal(lk[5], (4 * C, C), jnp.float32)
             ).astype(jnp.bfloat16),                                      # w2
            jnp.zeros((1, C), jnp.float32),                               # b2
        )
        params['blocks'].append(layer)
    return params


# --------------------------------- forward ------------------------------------

@functools.partial(jax.jit, static_argnames=("n_head", "block_size"))
def gpt_forward(idx, params, *, n_head, block_size):
    b, t = idx.shape
    assert t <= block_size, 'Cannot forward, model block size is exhausted'
    # glue: embedding gather + positional embedding add (dropout = identity)
    tok = jnp.take(params['tok_emb'], idx, axis=0)               # (B, T, C)
    x = tok + params['pos_emb'][:, :t, :]

    # additive causal bias, built once and shared by every layer
    row = jax.lax.broadcasted_iota(jnp.int32, (t, t), 0)
    col = jax.lax.broadcasted_iota(jnp.int32, (t, t), 1)
    causal_bias = jnp.where(col <= row, 0.0, -1e30).astype(jnp.float32)

    for layer_params in params['blocks']:
        x = run_block(x, causal_bias, layer_params, n_head)

    logits = run_head(x, params['ln_f_w'], params['ln_f_b'], params['head_w'])
    # TODO(synk): cross-entropy loss path (targets != None) not implemented;
    # PyTorch forward returns (logits, None) when targets is None.
    return logits, None


# ----------------------------------- main --------------------------------------

if __name__ == "__main__":
    vocab_size = 128
    block_size = 16
    n_layer = 2
    n_head = 2
    n_embd = 32
    B, T = 2, 8

    key = jax.random.PRNGKey(0)
    pkey, ikey = jax.random.split(key)
    params = init_params(pkey, vocab_size, block_size, n_layer, n_head, n_embd)
    idx = jax.random.randint(ikey, (B, T), 0, vocab_size, dtype=jnp.int32)

    logits, loss = gpt_forward(idx, params, n_head=n_head, block_size=block_size)
    logits = jax.block_until_ready(logits)
    assert logits.shape == (B, T, vocab_size)
    assert bool(jnp.all(jnp.isfinite(logits)))
    print("KERNEL_OK")
</pallas_src>

<mosaic_0001>
module attributes {stable_mosaic.version = 11 : i64} {
  func.func @_head_kernel(%arg0: i32, %arg1: i32, %arg2: memref<16x32xf32, #tpu.memory_space<vmem>>, %arg3: memref<1x32xf32, #tpu.memory_space<vmem>>, %arg4: memref<1x32xf32, #tpu.memory_space<vmem>>, %arg5: memref<32x128xbf16, #tpu.memory_space<vmem>>, %arg6: memref<16x128xf32, #tpu.memory_space<vmem>>, %arg7: memref<16x32xbf16, #tpu.memory_space<vmem>>) attributes {dimension_semantics = [#tpu.dimension_semantics<parallel>, #tpu.dimension_semantics<arbitrary>], iteration_bounds = array<i64: 1, 1>, scalar_prefetch = 0 : i64, scratch_operands = 1 : i64, tpu.core_type = #tpu.core_type<tc>, window_params = [{transform_indices = @transform_0, window_bounds = array<i64: 16, 32>}, {pipeline_mode = #tpu.pipeline_mode<synchronous>, transform_indices = @transform_1, window_bounds = array<i64: 1, 32>}, {pipeline_mode = #tpu.pipeline_mode<synchronous>, transform_indices = @transform_2, window_bounds = array<i64: 1, 32>}, {transform_indices = @transform_3, window_bounds = array<i64: 32, 128>}, {transform_indices = @transform_4, window_bounds = array<i64: 16, 128>}]} {
    %c0_i32 = arith.constant 0 : i32
    %0 = arith.cmpi eq, %arg1, %c0_i32 : i32
    %1 = arith.extui %0 : i1 to i32
    %c0_i32_0 = arith.constant 0 : i32
    %2 = arith.cmpi ne, %1, %c0_i32_0 : i32
    scf.if %2 {
      %c0_6 = arith.constant 0 : index
      %c0_7 = arith.constant 0 : index
      %7 = vector.load %arg2[%c0_6, %c0_7] : memref<16x32xf32, #tpu.memory_space<vmem>>, vector<16x32xf32>
      %c0_8 = arith.constant 0 : index
      %c0_9 = arith.constant 0 : index
      %8 = vector.load %arg3[%c0_8, %c0_9] : memref<1x32xf32, #tpu.memory_space<vmem>>, vector<1x32xf32>
      %c0_10 = arith.constant 0 : index
      %c0_11 = arith.constant 0 : index
      %9 = vector.load %arg4[%c0_10, %c0_11] : memref<1x32xf32, #tpu.memory_space<vmem>>, vector<1x32xf32>
      %cst_12 = arith.constant dense<0.000000e+00> : vector<16xf32>
      %10 = vector.multi_reduction <add>, %7, %cst_12 [1] : vector<16x32xf32> to vector<16xf32>
      %11 = vector.shape_cast %10 : vector<16xf32> to vector<16x1xf32>
      %cst_13 = arith.constant 3.200000e+01 : f32
      %12 = vector.broadcast %cst_13 : f32 to vector<16x1xf32>
      %13 = arith.divf %11, %12 : vector<16x1xf32>
      %14 = vector.broadcast %13 : vector<16x1xf32> to vector<16x32xf32>
      %15 = arith.subf %7, %14 : vector<16x32xf32>
      %16 = arith.mulf %15, %15 : vector<16x32xf32>
      %cst_14 = arith.constant dense<0.000000e+00> : vector<16xf32>
      %17 = vector.multi_reduction <add>, %16, %cst_14 [1] : vector<16x32xf32> to vector<16xf32>
      %18 = vector.shape_cast %17 : vector<16xf32> to vector<16x1xf32>
      %cst_15 = arith.constant 3.200000e+01 : f32
      %19 = vector.broadcast %cst_15 : f32 to vector<16x1xf32>
      %20 = arith.divf %18, %19 : vector<16x1xf32>
      %21 = vector.broadcast %13 : vector<16x1xf32> to vector<16x32xf32>
      %22 = arith.subf %7, %21 : vector<16x32xf32>
      %cst_16 = arith.constant 9.99999974E-6 : f32
      %23 = vector.broadcast %cst_16 : f32 to vector<16x1xf32>
      %24 = arith.addf %20, %23 : vector<16x1xf32>
      %25 = math.rsqrt %24 : vector<16x1xf32>
      %26 = vector.broadcast %25 : vector<16x1xf32> to vector<16x32xf32>
      %27 = arith.mulf %22, %26 : vector<16x32xf32>
      %28 = vector.broadcast %8 : vector<1x32xf32> to vector<16x32xf32>
      %29 = arith.mulf %27, %28 : vector<16x32xf32>
      %30 = vector.broadcast %9 : vector<1x32xf32> to vector<16x32xf32>
      %31 = arith.addf %29, %30 : vector<16x32xf32>
      %32 = arith.truncf %31 : vector<16x32xf32> to vector<16x32xbf16>
      %c0_17 = arith.constant 0 : index
      %c0_18 = arith.constant 0 : index
      %33 = vector.load %arg7[%c0_17, %c0_18] : memref<16x32xbf16, #tpu.memory_space<vmem>>, vector<16x32xbf16>
      tpu.vector_store %arg7[%c0_17, %c0_18], %32 {strides = array<i32>} : memref<16x32xbf16, #tpu.memory_space<vmem>>, vector<16x32xbf16>,
    } else {
    }
    %c0 = arith.constant 0 : index
    %c0_1 = arith.constant 0 : index
    %3 = vector.load %arg7[%c0, %c0_1] : memref<16x32xbf16, #tpu.memory_space<vmem>>, vector<16x32xbf16>
    %c0_2 = arith.constant 0 : index
    %c0_3 = arith.constant 0 : index
    %4 = vector.load %arg5[%c0_2, %c0_3] : memref<32x128xbf16, #tpu.memory_space<vmem>>, vector<32x128xbf16>
    %cst = arith.constant dense<0.000000e+00> : vector<16x128xf32>
    %5 = tpu.matmul %3, %4, %cst {dimension_numbers = #tpu.dot_dimension_numbers<[1], [0], [0], [1], [0, 0, 1, 1], [], []>} : vector<16x32xbf16>, vector<32x128xbf16>, vector<16x128xf32> -> vector<16x128xf32>
    %c0_4 = arith.constant 0 : index
    %c0_5 = arith.constant 0 : index
    %6 = vector.load %arg6[%c0_4, %c0_5] : memref<16x128xf32, #tpu.memory_space<vmem>>, vector<16x128xf32>
    tpu.vector_store %arg6[%c0_4, %c0_5], %5 {strides = array<i32>} : memref<16x128xf32, #tpu.memory_space<vmem>>, vector<16x128xf32>,
    return
  }
  func.func @transform_0(%arg0: i32, %arg1: i32) -> (i32, i32) {
    %c0_i32 = arith.constant 0 : i32
    %c0_i32_0 = arith.constant 0 : i32
    return %arg0, %c0_i32 : i32, i32
  }
  func.func @transform_1(%arg0: i32, %arg1: i32) -> (i32, i32) {
    %c0_i32 = arith.constant 0 : i32
    %c0_i32_0 = arith.constant 0 : i32
    %c0_i32_1 = arith.constant 0 : i32
    return %c0_i32, %c0_i32_0 : i32, i32
  }
  func.func @transform_2(%arg0: i32, %arg1: i32) -> (i32, i32) {
    %c0_i32 = arith.constant 0 : i32
    %c0_i32_0 = arith.constant 0 : i32
    %c0_i32_1 = arith.constant 0 : i32
    return %c0_i32, %c0_i32_0 : i32, i32
  }
  func.func @transform_3(%arg0: i32, %arg1: i32) -> (i32, i32) {
    %c0_i32 = arith.constant 0 : i32
    %c0_i32_0 = arith.constant 0 : i32
    return %c0_i32, %arg1 : i32, i32
  }
  func.func @transform_4(%arg0: i32, %arg1: i32) -> (i32, i32) {
    %c0_i32 = arith.constant 0 : i32
    return %arg0, %arg1 : i32, i32
  }
}

module attributes {stable_mosaic.version = 11 : i64} {
  func.func @_block_kernel(%arg0: i32, %arg1: memref<1x8x32xf32, #tpu.memory_space<vmem>>, %arg2: memref<8x8xf32, #tpu.memory_space<vmem>>, %arg3: memref<1x32xf32, #tpu.memory_space<vmem>>, %arg4: memref<1x32xf32, #tpu.memory_space<vmem>>, %arg5: memref<32x96xbf16, #tpu.memory_space<vmem>>, %arg6: memref<1x96xf32, #tpu.memory_space<vmem>>, %arg7: memref<32x32xbf16, #tpu.memory_space<vmem>>, %arg8: memref<1x32xf32, #tpu.memory_space<vmem>>, %arg9: memref<1x32xf32, #tpu.memory_space<vmem>>, %arg10: memref<1x32xf32, #tpu.memory_space<vmem>>, %arg11: memref<32x128xbf16, #tpu.memory_space<vmem>>, %arg12: memref<1x128xf32, #tpu.memory_space<vmem>>, %arg13: memref<128x32xbf16, #tpu.memory_space<vmem>>, %arg14: memref<1x32xf32, #tpu.memory_space<vmem>>, %arg15: memref<1x8x32xf32, #tpu.memory_space<vmem>>) attributes {dimension_semantics = [#tpu.dimension_semantics<parallel>], iteration_bounds = array<i64: 2>, scalar_prefetch = 0 : i64, scratch_operands = 0 : i64, tpu.core_type = #tpu.core_type<tc>, window_params = [{transform_indices = @transform_0, window_bounds = array<i64: 1, 8, 32>}, {pipeline_mode = #tpu.pipeline_mode<synchronous>, transform_indices = @transform_1, window_bounds = array<i64: 8, 8>}, {pipeline_mode = #tpu.pipeline_mode<synchronous>, transform_indices = @transform_2, window_bounds = array<i64: 1, 32>}, {pipeline_mode = #tpu.pipeline_mode<synchronous>, transform_indices = @transform_3, window_bounds = array<i64: 1, 32>}, {pipeline_mode = #tpu.pipeline_mode<synchronous>, transform_indices = @transform_4, window_bounds = array<i64: 32, 96>}, {pipeline_mode = #tpu.pipeline_mode<synchronous>, transform_indices = @transform_5, window_bounds = array<i64: 1, 96>}, {pipeline_mode = #tpu.pipeline_mode<synchronous>, transform_indices = @transform_6, window_bounds = array<i64: 32, 32>}, {pipeline_mode = #tpu.pipeline_mode<synchronous>, transform_indices = @transform_7, window_bounds = array<i64: 1, 32>}, {pipeline_mode = #tpu.pipeline_mode<synchronous>, transform_indices = @transform_8, window_bounds = array<i64: 1, 32>}, {pipeline_mode = #tpu.pipeline_mode<synchronous>, transform_indices = @transform_9, window_bounds = array<i64: 1, 32>}, {pipeline_mode = #tpu.pipeline_mode<synchronous>, transform_indices = @transform_10, window_bounds = array<i64: 32, 128>}, {pipeline_mode = #tpu.pipeline_mode<synchronous>, transform_indices = @transform_11, window_bounds = array<i64: 1, 128>}, {pipeline_mode = #tpu.pipeline_mode<synchronous>, transform_indices = @transform_12, window_bounds = array<i64: 128, 32>}, {pipeline_mode = #tpu.pipeline_mode<synchronous>, transform_indices = @transform_13, window_bounds = array<i64: 1, 32>}, {transform_indices = @transform_14, window_bounds = array<i64: 1, 8, 32>}]} {
    %c0 = arith.constant 0 : index
    %c0_0 = arith.constant 0 : index
    %c0_1 = arith.constant 0 : index
    %0 = vector.load %arg1[%c0, %c0_0, %c0_1] : memref<1x8x32xf32, #tpu.memory_space<vmem>>, vector<1x8x32xf32>
    %1 = vector.shape_cast %0 : vector<1x8x32xf32> to vector<8x32xf32>
    %c0_2 = arith.constant 0 : index
    %c0_3 = arith.constant 0 : index
    %2 = vector.load %arg3[%c0_2, %c0_3] : memref<1x32xf32, #tpu.memory_space<vmem>>, vector<1x32xf32>
    %c0_4 = arith.constant 0 : index
    %c0_5 = arith.constant 0 : index
    %3 = vector.load %arg4[%c0_4, %c0_5] : memref<1x32xf32, #tpu.memory_space<vmem>>, vector<1x32xf32>
    %cst = arith.constant dense<0.000000e+00> : vector<8xf32>
    %4 = vector.multi_reduction <add>, %1, %cst [1] : vector<8x32xf32> to vector<8xf32>
    %5 = vector.shape_cast %4 : vector<8xf32> to vector<8x1xf32>
    %cst_6 = arith.constant 3.200000e+01 : f32
    %6 = vector.broadcast %cst_6 : f32 to vector<8x1xf32>
    %7 = arith.divf %5, %6 : vector<8x1xf32>
    %8 = vector.broadcast %7 : vector<8x1xf32> to vector<8x32xf32>
    %9 = arith.subf %1, %8 : vector<8x32xf32>
    %10 = arith.mulf %9, %9 : vector<8x32xf32>
    %cst_7 = arith.constant dense<0.000000e+00> : vector<8xf32>
    %11 = vector.multi_reduction <add>, %10, %cst_7 [1] : vector<8x32xf32> to vector<8xf32>
    %12 = vector.shape_cast %11 : vector<8xf32> to vector<8x1xf32>
    %cst_8 = arith.constant 3.200000e+01 : f32
    %13 = vector.broadcast %cst_8 : f32 to vector<8x1xf32>
    %14 = arith.divf %12, %13 : vector<8x1xf32>
    %15 = vector.broadcast %7 : vector<8x1xf32> to vector<8x32xf32>
    %16 = arith.subf %1, %15 : vector<8x32xf32>
    %cst_9 = arith.constant 9.99999974E-6 : f32
    %17 = vector.broadcast %cst_9 : f32 to vector<8x1xf32>
    %18 = arith.addf %14, %17 : vector<8x1xf32>
    %19 = math.rsqrt %18 : vector<8x1xf32>
    %20 = vector.broadcast %19 : vector<8x1xf32> to vector<8x32xf32>
    %21 = arith.mulf %16, %20 : vector<8x32xf32>
    %22 = vector.broadcast %2 : vector<1x32xf32> to vector<8x32xf32>
    %23 = arith.mulf %21, %22 : vector<8x32xf32>
    %24 = vector.broadcast %3 : vector<1x32xf32> to vector<8x32xf32>
    %25 = arith.addf %23, %24 : vector<8x32xf32>
    %26 = arith.truncf %25 : vector<8x32xf32> to vector<8x32xbf16>
    %c0_10 = arith.constant 0 : index
    %c0_11 = arith.constant 0 : index
    %27 = vector.load %arg5[%c0_10, %c0_11] : memref<32x96xbf16, #tpu.memory_space<vmem>>, vector<32x96xbf16>
    %cst_12 = arith.constant dense<0.000000e+00> : vector<8x96xf32>
    %28 = tpu.matmul %26, %27, %cst_12 {dimension_numbers = #tpu.dot_dimension_numbers<[1], [0], [0], [1], [0, 0, 1, 1], [], []>} : vector<8x32xbf16>, vector<32x96xbf16>, vector<8x96xf32> -> vector<8x96xf32>
    %c0_13 = arith.constant 0 : index
    %c0_14 = arith.constant 0 : index
    %29 = vector.load %arg6[%c0_13, %c0_14] : memref<1x96xf32, #tpu.memory_space<vmem>>, vector<1x96xf32>
    %30 = vector.broadcast %29 : vector<1x96xf32> to vector<8x96xf32>
    %31 = arith.addf %28, %30 : vector<8x96xf32>
    %32 = vector.extract_strided_slice %31 {offsets = [0, 0], sizes = [8, 32], strides = [1, 1]} : vector<8x96xf32> to vector<8x32xf32>
    %cst_15 = arith.constant 2.500000e-01 : f32
    %33 = vector.broadcast %cst_15 : f32 to vector<8x32xf32>
    %34 = arith.mulf %32, %33 : vector<8x32xf32>
    %35 = vector.extract_strided_slice %31 {offsets = [0, 32], sizes = [8, 32], strides = [1, 1]} : vector<8x96xf32> to vector<8x32xf32>
    %36 = vector.extract_strided_slice %31 {offsets = [0, 64], sizes = [8, 32], strides = [1, 1]} : vector<8x96xf32> to vector<8x32xf32>
    %37 = vector.shape_cast %34 : vector<8x32xf32> to vector<8x2x16xf32>
    %38 = tpu.transpose %37, [1, 0, 2] : vector<8x2x16xf32> -> vector<2x8x16xf32>
    %39 = arith.truncf %38 : vector<2x8x16xf32> to vector<2x8x16xbf16>
    %40 = vector.shape_cast %35 : vector<8x32xf32> to vector<8x2x16xf32>
    %41 = tpu.transpose %40, [1, 0, 2] : vector<8x2x16xf32> -> vector<2x8x16xf32>
    %42 = arith.truncf %41 : vector<2x8x16xf32> to vector<2x8x16xbf16>
    %43 = vector.shape_cast %36 : vector<8x32xf32> to vector<8x2x16xf32>
    %44 = tpu.transpose %43, [1, 0, 2] : vector<8x2x16xf32> -> vector<2x8x16xf32>
    %45 = arith.truncf %44 : vector<2x8x16xf32> to vector<2x8x16xbf16>
    "tpu.trace_start"() <{level = 10 : i32, message = "htd,hsd->hts"}> : () -> ()
    %cst_16 = arith.constant dense<0.000000e+00> : vector<2x8x8xf32>
    %46 = tpu.matmul %39, %42, %cst_16 {dimension_numbers = #tpu.dot_dimension_numbers<[2], [2], [1], [1], [0, 0, 0, 1, 1, 1], [0], [0]>} : vector<2x8x16xbf16>, vector<2x8x16xbf16>, vector<2x8x8xf32> -> vector<2x8x8xf32>
    "tpu.trace_stop"() : () -> ()
    %c0_17 = arith.constant 0 : index
    %c0_18 = arith.constant 0 : index
    %47 = vector.load %arg2[%c0_17, %c0_18] : memref<8x8xf32, #tpu.memory_space<vmem>>, vector<8x8xf32>
    %48 = vector.shape_cast %47 : vector<8x8xf32> to vector<1x8x8xf32>
    %49 = vector.broadcast %48 : vector<1x8x8xf32> to vector<2x8x8xf32>
    %50 = arith.addf %46, %49 : vector<2x8x8xf32>
    %cst_19 = arith.constant dense<0xFF800000> : vector<2x8xf32>
    %51 = vector.multi_reduction <maximumf>, %50, %cst_19 [2] : vector<2x8x8xf32> to vector<2x8xf32>
    %52 = vector.shape_cast %51 : vector<2x8xf32> to vector<2x8x1xf32>
    %53 = vector.broadcast %52 : vector<2x8x1xf32> to vector<2x8x8xf32>
    %54 = arith.subf %50, %53 : vector<2x8x8xf32>
    %55 = math.exp %54 : vector<2x8x8xf32>
    %cst_20 = arith.constant dense<0.000000e+00> : vector<2x8xf32>
    %56 = vector.multi_reduction <add>, %55, %cst_20 [2] : vector<2x8x8xf32> to vector<2x8xf32>
    %57 = vector.shape_cast %56 : vector<2x8xf32> to vector<2x8x1xf32>
    %58 = tpu.reciprocal %57 {approx = true} : vector<2x8x1xf32> -> vector<2x8x1xf32>
    %59 = vector.broadcast %58 : vector<2x8x1xf32> to vector<2x8x8xf32>
    %60 = arith.mulf %55, %59 : vector<2x8x8xf32>
    %61 = arith.truncf %60 : vector<2x8x8xf32> to vector<2x8x8xbf16>
    "tpu.trace_start"() <{level = 10 : i32, message = "hts,hsd->htd"}> : () -> ()
    %cst_21 = arith.constant dense<0.000000e+00> : vector<2x8x16xf32>
    %62 = tpu.matmul %61, %45, %cst_21 {dimension_numbers = #tpu.dot_dimension_numbers<[2], [1], [1], [2], [0, 0, 0, 1, 1, 2], [0], [0]>} : vector<2x8x8xbf16>, vector<2x8x16xbf16>, vector<2x8x16xf32> -> vector<2x8x16xf32>
    "tpu.trace_stop"() : () -> ()
    %63 = tpu.transpose %62, [1, 0, 2] : vector<2x8x16xf32> -> vector<8x2x16xf32>
    %64 = vector.shape_cast %63 : vector<8x2x16xf32> to vector<8x32xf32>
    %65 = arith.truncf %64 : vector<8x32xf32> to vector<8x32xbf16>
    %c0_22 = arith.constant 0 : index
    %c0_23 = arith.constant 0 : index
    %66 = vector.load %arg7[%c0_22, %c0_23] : memref<32x32xbf16, #tpu.memory_space<vmem>>, vector<32x32xbf16>
    %cst_24 = arith.constant dense<0.000000e+00> : vector<8x32xf32>
    %67 = tpu.matmul %65, %66, %cst_24 {dimension_numbers = #tpu.dot_dimension_numbers<[1], [0], [0], [1], [0, 0, 1, 1], [], []>} : vector<8x32xbf16>, vector<32x32xbf16>, vector<8x32xf32> -> vector<8x32xf32>
    %c0_25 = arith.constant 0 : index
    %c0_26 = arith.constant 0 : index
    %68 = vector.load %arg8[%c0_25, %c0_26] : memref<1x32xf32, #tpu.memory_space<vmem>>, vector<1x32xf32>
    %69 = vector.broadcast %68 : vector<1x32xf32> to vector<8x32xf32>
    %70 = arith.addf %67, %69 : vector<8x32xf32>
    %71 = arith.addf %1, %70 : vector<8x32xf32>
    %c0_27 = arith.constant 0 : index
    %c0_28 = arith.constant 0 : index
    %72 = vector.load %arg9[%c0_27, %c0_28] : memref<1x32xf32, #tpu.memory_space<vmem>>, vector<1x32xf32>
    %c0_29 = arith.constant 0 : index
    %c0_30 = arith.constant 0 : index
    %73 = vector.load %arg10[%c0_29, %c0_30] : memref<1x32xf32, #tpu.memory_space<vmem>>, vector<1x32xf32>
    %cst_31 = arith.constant dense<0.000000e+00> : vector<8xf32>
    %74 = vector.multi_reduction <add>, %71, %cst_31 [1] : vector<8x32xf32> to vector<8xf32>
    %75 = vector.shape_cast %74 : vector<8xf32> to vector<8x1xf32>
    %cst_32 = arith.constant 3.200000e+01 : f32
    %76 = vector.broadcast %cst_32 : f32 to vector<8x1xf32>
    %77 = arith.divf %75, %76 : vector<8x1xf32>
    %78 = vector.broadcast %77 : vector<8x1xf32> to vector<8x32xf32>
    %79 = arith.subf %71, %78 : vector<8x32xf32>
    %80 = arith.mulf %79, %79 : vector<8x32xf32>
    %cst_33 = arith.constant dense<0.000000e+00> : vector<8xf32>
    %81 = vector.multi_reduction <add>, %80, %cst_33 [1] : vector<8x32xf32> to vector<8xf32>
    %82 = vector.shape_cast %81 : vector<8xf32> to vector<8x1xf32>
    %cst_34 = arith.constant 3.200000e+01 : f32
    %83 = vector.broadcast %cst_34 : f32 to vector<8x1xf32>
    %84 = arith.divf %82, %83 : vector<8x1xf32>
    %85 = vector.broadcast %77 : vector<8x1xf32> to vector<8x32xf32>
    %86 = arith.subf %71, %85 : vector<8x32xf32>
    %cst_35 = arith.constant 9.99999974E-6 : f32
    %87 = vector.broadcast %cst_35 : f32 to vector<8x1xf32>
    %88 = arith.addf %84, %87 : vector<8x1xf32>
    %89 = math.rsqrt %88 : vector<8x1xf32>
    %90 = vector.broadcast %89 : vector<8x1xf32> to vector<8x32xf32>
    %91 = arith.mulf %86, %90 : vector<8x32xf32>
    %92 = vector.broadcast %72 : vector<1x32xf32> to vector<8x32xf32>
    %93 = arith.mulf %91, %92 : vector<8x32xf32>
    %94 = vector.broadcast %73 : vector<1x32xf32> to vector<8x32xf32>
    %95 = arith.addf %93, %94 : vector<8x32xf32>
    %96 = arith.truncf %95 : vector<8x32xf32> to vector<8x32xbf16>
    %c0_36 = arith.constant 0 : index
    %c0_37 = arith.constant 0 : index
    %97 = vector.load %arg11[%c0_36, %c0_37] : memref<32x128xbf16, #tpu.memory_space<vmem>>, vector<32x128xbf16>
    %cst_38 = arith.constant dense<0.000000e+00> : vector<8x128xf32>
    %98 = tpu.matmul %96, %97, %cst_38 {dimension_numbers = #tpu.dot_dimension_numbers<[1], [0], [0], [1], [0, 0, 1, 1], [], []>} : vector<8x32xbf16>, vector<32x128xbf16>, vector<8x128xf32> -> vector<8x128xf32>
    %c0_39 = arith.constant 0 : index
    %c0_40 = arith.constant 0 : index
    %99 = vector.load %arg12[%c0_39, %c0_40] : memref<1x128xf32, #tpu.memory_space<vmem>>, vector<1x128xf32>
    %100 = vector.broadcast %99 : vector<1x128xf32> to vector<8x128xf32>
    %101 = arith.addf %98, %100 : vector<8x128xf32>
    %cst_41 = arith.constant 5.000000e-01 : f32
    %102 = vector.broadcast %cst_41 : f32 to vector<8x128xf32>
    %103 = arith.mulf %102, %101 : vector<8x128xf32>
    %cst_42 = arith.constant 0.707106769 : f32
    %104 = vector.broadcast %cst_42 : f32 to vector<8x128xf32>
    %105 = arith.mulf %101, %104 : vector<8x128xf32>
    %cst_43 = arith.constant 0.000000e+00 : f32
    %106 = vector.broadcast %cst_43 : f32 to vector<8x128xf32>
    %107 = arith.cmpf oge, %105, %106 : vector<8x128xf32>
    %cst_44 = arith.constant 1.000000e+00 : f32
    %cst_45 = arith.constant -1.000000e+00 : f32
    %108 = vector.broadcast %cst_44 : f32 to vector<8x128xf32>
    %109 = vector.broadcast %cst_45 : f32 to vector<8x128xf32>
    %110 = arith.select %107, %108, %109 : vector<8x128xi1>, vector<8x128xf32>
    %111 = math.absf %105 : vector<8x128xf32>
    %cst_46 = arith.constant 0.327591091 : f32
    %112 = vector.broadcast %cst_46 : f32 to vector<8x128xf32>
    %113 = arith.mulf %112, %111 : vector<8x128xf32>
    %cst_47 = arith.constant 1.000000e+00 : f32
    %114 = vector.broadcast %cst_47 : f32 to vector<8x128xf32>
    %115 = arith.addf %114, %113 : vector<8x128xf32>
    %cst_48 = arith.constant 1.000000e+00 : f32
    %116 = vector.broadcast %cst_48 : f32 to vector<8x128xf32>
    %117 = arith.divf %116, %115 : vector<8x128xf32>
    %cst_49 = arith.constant 1.06140542 : f32
    %118 = vector.broadcast %cst_49 : f32 to vector<8x128xf32>
    %119 = arith.mulf %118, %117 : vector<8x128xf32>
    %cst_50 = arith.constant -1.45315206 : f32
    %120 = vector.broadcast %cst_50 : f32 to vector<8x128xf32>
    %121 = arith.addf %119, %120 : vector<8x128xf32>
    %122 = arith.mulf %121, %117 : vector<8x128xf32>
    %cst_51 = arith.constant 1.42141378 : f32
    %123 = vector.broadcast %cst_51 : f32 to vector<8x128xf32>
    %124 = arith.addf %122, %123 : vector<8x128xf32>
    %125 = arith.mulf %124, %117 : vector<8x128xf32>
    %cst_52 = arith.constant -0.284496725 : f32
    %126 = vector.broadcast %cst_52 : f32 to vector<8x128xf32>
    %127 = arith.addf %125, %126 : vector<8x128xf32>
    %128 = arith.mulf %127, %117 : vector<8x128xf32>
    %cst_53 = arith.constant 0.254829586 : f32
    %129 = vector.broadcast %cst_53 : f32 to vector<8x128xf32>
    %130 = arith.addf %128, %129 : vector<8x128xf32>
    %131 = arith.mulf %130, %117 : vector<8x128xf32>
    %cst_54 = arith.constant 0.000000e+00 : f32
    %132 = vector.broadcast %cst_54 : f32 to vector<8x128xf32>
    %133 = arith.subf %132, %111 : vector<8x128xf32>
    %134 = arith.mulf %133, %111 : vector<8x128xf32>
    %135 = math.exp %134 : vector<8x128xf32>
    %136 = arith.mulf %131, %135 : vector<8x128xf32>
    %cst_55 = arith.constant 1.000000e+00 : f32
    %137 = vector.broadcast %cst_55 : f32 to vector<8x128xf32>
    %138 = arith.subf %137, %136 : vector<8x128xf32>
    %139 = arith.mulf %110, %138 : vector<8x128xf32>
    %cst_56 = arith.constant 1.000000e+00 : f32
    %140 = vector.broadcast %cst_56 : f32 to vector<8x128xf32>
    %141 = arith.addf %140, %139 : vector<8x128xf32>
    %142 = arith.mulf %103, %141 : vector<8x128xf32>
    %143 = arith.truncf %142 : vector<8x128xf32> to vector<8x128xbf16>
    %c0_57 = arith.constant 0 : index
    %c0_58 = arith.constant 0 : index
    %144 = vector.load %arg13[%c0_57, %c0_58] : memref<128x32xbf16, #tpu.memory_space<vmem>>, vector<128x32xbf16>
    %cst_59 = arith.constant dense<0.000000e+00> : vector<8x32xf32>
    %145 = tpu.matmul %143, %144, %cst_59 {dimension_numbers = #tpu.dot_dimension_numbers<[1], [0], [0], [1], [0, 0, 1, 1], [], []>} : vector<8x128xbf16>, vector<128x32xbf16>, vector<8x32xf32> -> vector<8x32xf32>
    %c0_60 = arith.constant 0 : index
    %c0_61 = arith.constant 0 : index
    %146 = vector.load %arg14[%c0_60, %c0_61] : memref<1x32xf32, #tpu.memory_space<vmem>>, vector<1x32xf32>
    %147 = vector.broadcast %146 : vector<1x32xf32> to vector<8x32xf32>
    %148 = arith.addf %145, %147 : vector<8x32xf32>
    %149 = arith.addf %71, %148 : vector<8x32xf32>
    %c0_62 = arith.constant 0 : index
    %c0_63 = arith.constant 0 : index
    %c0_64 = arith.constant 0 : index
    %150 = vector.load %arg15[%c0_62, %c0_63, %c0_64] : memref<1x8x32xf32, #tpu.memory_space<vmem>>, vector<1x8x32xf32>
    %151 = vector.shape_cast %150 : vector<1x8x32xf32> to vector<8x32xf32>
    %152 = vector.shape_cast %149 : vector<8x32xf32> to vector<1x8x32xf32>
    tpu.vector_store %arg15[%c0_62, %c0_63, %c0_64], %152 {strides = array<i32>} : memref<1x8x32xf32, #tpu.memory_space<vmem>>, vector<1x8x32xf32>,
    return
  }
  func.func @transform_0(%arg0: i32) -> (i32, i32, i32) {
    %c0_i32 = arith.constant 0 : i32
    %c0_i32_0 = arith.constant 0 : i32
    %c0_i32_1 = arith.constant 0 : i32
    return %arg0, %c0_i32, %c0_i32_0 : i32, i32, i32
  }
  func.func @transform_1(%arg0: i32) -> (i32, i32) {
    %c0_i32 = arith.constant 0 : i32
    %c0_i32_0 = arith.constant 0 : i32
    %c0_i32_1 = arith.constant 0 : i32
    return %c0_i32, %c0_i32_0 : i32, i32
  }
  func.func @transform_2(%arg0: i32) -> (i32, i32) {
    %c0_i32 = arith.constant 0 : i32
    %c0_i32_0 = arith.constant 0 : i32
    %c0_i32_1 = arith.constant 0 : i32
    return %c0_i32, %c0_i32_0 : i32, i32
  }
  func.func @transform_3(%arg0: i32) -> (i32, i32) {
    %c0_i32 = arith.constant 0 : i32
    %c0_i32_0 = arith.constant 0 : i32
    %c0_i32_1 = arith.constant 0 : i32
    return %c0_i32, %c0_i32_0 : i32, i32
  }
  func.func @transform_4(%arg0: i32) -> (i32, i32) {
    %c0_i32 = arith.constant 0 : i32
    %c0_i32_0 = arith.constant 0 : i32
    %c0_i32_1 = arith.constant 0 : i32
    return %c0_i32, %c0_i32_0 : i32, i32
  }
  func.func @transform_5(%arg0: i32) -> (i32, i32) {
    %c0_i32 = arith.constant 0 : i32
    %c0_i32_0 = arith.constant 0 : i32
    %c0_i32_1 = arith.constant 0 : i32
    return %c0_i32, %c0_i32_0 : i32, i32
  }
  func.func @transform_6(%arg0: i32) -> (i32, i32) {
    %c0_i32 = arith.constant 0 : i32
    %c0_i32_0 = arith.constant 0 : i32
    %c0_i32_1 = arith.constant 0 : i32
    return %c0_i32, %c0_i32_0 : i32, i32
  }
  func.func @transform_7(%arg0: i32) -> (i32, i32) {
    %c0_i32 = arith.constant 0 : i32
    %c0_i32_0 = arith.constant 0 : i32
    %c0_i32_1 = arith.constant 0 : i32
    return %c0_i32, %c0_i32_0 : i32, i32
  }
  func.func @transform_8(%arg0: i32) -> (i32, i32) {
    %c0_i32 = arith.constant 0 : i32
    %c0_i32_0 = arith.constant 0 : i32
    %c0_i32_1 = arith.constant 0 : i32
    return %c0_i32, %c0_i32_0 : i32, i32
  }
  func.func @transform_9(%arg0: i32) -> (i32, i32) {
    %c0_i32 = arith.constant 0 : i32
    %c0_i32_0 = arith.constant 0 : i32
    %c0_i32_1 = arith.constant 0 : i32
    return %c0_i32, %c0_i32_0 : i32, i32
  }
  func.func @transform_10(%arg0: i32) -> (i32, i32) {
    %c0_i32 = arith.constant 0 : i32
    %c0_i32_0 = arith.constant 0 : i32
    %c0_i32_1 = arith.constant 0 : i32
    return %c0_i32, %c0_i32_0 : i32, i32
  }
  func.func @transform_11(%arg0: i32) -> (i32, i32) {
    %c0_i32 = arith.constant 0 : i32
    %c0_i32_0 = arith.constant 0 : i32
    %c0_i32_1 = arith.constant 0 : i32
    return %c0_i32, %c0_i32_0 : i32, i32
  }
  func.func @transform_12(%arg0: i32) -> (i32, i32) {
    %c0_i32 = arith.constant 0 : i32
    %c0_i32_0 = arith.constant 0 : i32
    %c0_i32_1 = arith.constant 0 : i32
    return %c0_i32, %c0_i32_0 : i32, i32
  }
  func.func @transform_13(%arg0: i32) -> (i32, i32) {
    %c0_i32 = arith.constant 0 : i32
    %c0_i32_0 = arith.constant 0 : i32
    %c0_i32_1 = arith.constant 0 : i32
    return %c0_i32, %c0_i32_0 : i32, i32
  }
  func.func @transform_14(%arg0: i32) -> (i32, i32, i32) {
    %c0_i32 = arith.constant 0 : i32
    %c0_i32_0 = arith.constant 0 : i32
    %c0_i32_1 = arith.constant 0 : i32
    return %arg0, %c0_i32, %c0_i32_0 : i32, i32, i32
  }
}

</mosaic_0001>

<bundles_post_ra>
// kernel: gpt_forward.5
= control target key start
LH: loop header
LB: loop body
LE: loop exit
PB: predicated region body
PF: predicated region fallthrough
CT: control target
= control target key end

     0   :  { %vm27_vm0 = vcmask 261120   ;;  %s279_s0 = inlined_call_operand.vmem [shape: f32[16,32], index: 0, kind: input, shape index: {}]   ;;  %s280_s1 = inlined_call_operand.vmem [shape: f32[1,32], index: 1, kind: input, shape index: {}]   ;;  %s281_s2 = inlined_call_operand.vmem [shape: f32[1,32], index: 2, kind: input, shape index: {}]   ;;  %s282_s3 = inlined_call_operand.vmem [shape: bf16[32,128], index: 3, kind: input, shape index: {}]   ;;  %s283_s4 = inlined_call_operand.hbm [shape: f32[16,128], index: 4, kind: output, shape index: {}]  }
   0x1   :  { %v23_v0 = vld [vmem:[%s279_s0] sm:$0xff]  ;;  %v24_v1 = vld [vmem:[%s279_s0 + $0x8] sm:$0xff] }
   0x2   :  { %v28_v2 = vsel %vm27_vm0, %v23_v0, 0.0 }
   0x3   :  { %29 = vadd.xlane.f32.xlu0 %v28_v2 }
   0x4   :  { %9 = vsyncpa [#allocation4], 0  ;;  %v31_v3 = vsel %vm27_vm0, %v24_v1, 0.0  ;;  %v194_v14 = vld [vmem:[%s282_s3 + $0x8] sm:$0xff]   ;;  %v223_v15 = vmov 0.0   ;;  %vm224_vm1 = vmmov 0  }
   0x5   :  { %181 = vmatprep.subr.bf16.mxu0 %v223_v15  ;;  %185 = vmatprep.mubr.msk.bf16.mxu0 %vm224_vm1, %v223_v15  ;;  %v195_v16 = vld [vmem:[%s282_s3] sm:$0xff]   ;;  %vm79_vm2 = vcmask 257024  }
   0x6   :  { %182 = vmatpush3.bf16.msra.mxu0 %v194_v14  ;;  %v168_v24 = vld [vmem:[%s280_s1] ss:$0 sm:$0xff]  ;;  %s225_s1 = smov [#allocation3]  }
   0x7   :  { %32 = vadd.xlane.f32.xlu0 %v31_v3  ;;  %183 = vmatprep.subr.bf16.mxu0 %v223_v15  ;;  %v169_v26 = vld [vmem:[%s281_s2] ss:$0 sm:$0xff]  ;;  %s157_s3 = sshll.u32 %s225_s1, 4  ;;  %s158_s3 = int_to_ptr.vmem [resolvable:$true] %s157_s3 }
   0x8   :  { %s201_s2 = scalar_lea.vmem %s158_s3, 256  ;;  %p206_p1 = scmp.lt.s32.totalorder %s158_s3, %s158_s3 }
   0x9   :  { %p202_p0 = scmp.ne.s32.totalorder %s158_s3, %s201_s2  ;;  %p207_p2 = scmp.lt.s32.totalorder %s201_s2, %s201_s2 }
   0xa   :  { %184 = vmatpush3.bf16.msra.mxu0 %v195_v16 }
   0xb   :  { %p208_p3 = por %p207_p2, %p206_p1 }
   0xd   :  { %p209_p4 = pnand %p208_p3, %p202_p0 }
  0x8c   :  { %v30_v4 = vpop.xlane.xlu0 %29 }
  0x8d   :  { %v35_v5 = vmul.f32 0.03125, %v30_v4 }
  0x8f   :  { %v37_v6 = vsub.f32 %v23_v0, %v35_v5 }
  0x90   :  { %v33_v7 = vpop.xlane.xlu0 %32 }
  0x91   :  { %v36_v8 = vmul.f32 0.03125, %v33_v7  ;;  %v39_v9 = vmul.f32 %v37_v6, %v37_v6 }
  0x93   :  { %v38_v10 = vsub.f32 %v24_v1, %v36_v8  ;;  %v41_v11 = vsel %vm27_vm0, %v39_v9, 0.0 }
  0x94   :  { %42 = vadd.xlane.f32.xlu1 %v41_v11 }
  0x95   :  { %v40_v12 = vmul.f32 %v38_v10, %v38_v10 }
  0x97   :  { %v44_v13 = vsel %vm27_vm0, %v40_v12, 0.0 }
  0x98   :  { %45 = vadd.xlane.f32.xlu1 %v44_v13 }
 0x11d   :  { %v43_v17 = vpop.xlane.xlu1 %42 }
 0x11e   :  { %v47_v18 = vmul.f32 0.03125, %v43_v17 }
 0x120   :  { %v49_v19 = vadd.f32 1e-05, %v47_v18 }
 0x121   :  { %v46_v20 = vpop.xlane.xlu1 %45 }
 0x122   :  { %197 = vrsqrt.f32 %v49_v19  ;;  %v48_v21 = vmul.f32 0.03125, %v46_v20 }
 0x124   :  { %v50_v22 = vadd.f32 1e-05, %v48_v21 }
 0x126   :  { %199 = vrsqrt.f32 %v50_v22 }
 0x12f   :  { %v198_v23 = vpop.eup %197 }
 0x130   :  { %v53_v25 = vmul.f32 %v198_v23, %v37_v6 }
 0x132   :  { %v61_v27 = vmul.f32 %v168_v24, %v53_v25 }
 0x133   :  { %v200_v28 = vpop.eup %199 }
 0x134   :  { %v69_v29 = vadd.f32 %v169_v26, %v61_v27  ;;  %v54_v30 = vmul.f32 %v200_v28, %v38_v10 }
 0x136   :  { %v176_v31 = vpack.c.bf16 %v69_v29, %v69_v29  ;;  %v62_v32 = vmul.f32 %v168_v24, %v54_v30 }
 0x138   :  { %80 = vst.msk [vmem:[#allocation2] sm:$0xf] %vm79_vm2, %v176_v31  ;;  %v70_v33 = vadd.f32 %v169_v26, %v62_v32 }
 0x13a   :  { %v177_v34 = vpack.c.bf16 %v70_v33, %v70_v33 }
 0x13c   :  { %81 = vst.msk [vmem:[#allocation2 + $0x4] sm:$0xf] %vm79_vm2, %v177_v34 }
 0x143   :  { %v196_v35 = vld [vmem:[#allocation2] sm:$0xff]  }
 0x144   :  { %186 = vmatmul.mubr.msk.bf16.vlgmr.msra.gmra.mxu0 %vm27_vm0, %v196_v35 }
 0x204   :  { %v143_v36 = vpop.f32.mrf.mxu0 }
 0x205   :  { %150 = vst [vmem:[#allocation3] sm:$0xff] %v143_v36 }
 0x206   :  { %v187_v37 = vpop.f32.mrf.mxu0 }
 0x208   :  { %v146_v38 = vpop.f32.mrf.mxu0 }
 0x209   :  { %151 = vst [vmem:[#allocation3 + $0x8] sm:$0xff] %v146_v38 }
 0x20a   :  { %v188_v39 = vpop.f32.mrf.mxu0 }
 0x20b   :  { %212 = shalt.err (!%p209_p4)
}
 0x20c   :  { %s226_s26 = smov 128   ;;  %s227_s27 = smov 8  }
 0x20d   :  { %163 = dma.vmem_to_hbm [thread:$0]  %s158_s3, 256, %s283_s4, [#allocation4], %s226_s26, %s226_s26, %s227_s27  }
 0x20e   :  { %221 = dma.done.wait [#allocation4], 256  }
 0x20f   :  { %222 = vsyncadd [#allocation4], 4294967040 }
 0x210   :  { %167 = vsyncpa [#allocation4], 1 }

// kernel: gpt_forward.3
= control target key start
LH: loop header
LB: loop body
LE: loop exit
PB: predicated region body
PF: predicated region fallthrough
CT: control target
= control target key end

     0   :  { %s1907_s29 = smov 0   ;;  %s2141_s0 = inlined_call_operand.vmem [shape: f32[2,8,32], index: 0, kind: input, shape index: {}, may-alias: {0,14}]   ;;  %s2142_s1 = inlined_call_operand.vmem [shape: f32[8,8], index: 1, kind: input, shape index: {}]   ;;  %s2143_s2 = inlined_call_operand.vmem [shape: f32[1,32], index: 2, kind: input, shape index: {}]   ;;  %s2144_s3 = inlined_call_operand.vmem [shape: f32[1,32], index: 3, kind: input, shape index: {}]   ;;  %s2145_s4 = inlined_call_operand.vmem [shape: bf16[32,96], index: 4, kind: input, shape index: {}]   ;;  %s2146_s5 = inlined_call_operand.vmem [shape: f32[1,96], index: 5, kind: input, shape index: {}]   ;;  %s2147_s6 = inlined_call_operand.vmem [shape: bf16[32,32], index: 6, kind: input, shape index: {}]   ;;  %s2148_s7 = inlined_call_operand.vmem [shape: f32[1,32], index: 7, kind: input, shape index: {}]   ;;  %s2149_s8 = inlined_call_operand.vmem [shape: f32[1,32], index: 8, kind: input, shape index: {}]   ;;  %s2150_s9 = inlined_call_operand.vmem [shape: f32[1,32], index: 9, kind: input, shape index: {}]   ;;  %s2151_s10 = inlined_call_operand.vmem [shape: bf16[32,128], index: 10, kind: input, shape index: {}]   ;;  %s2152_s11 = inlined_call_operand.vmem [shape: f32[1,128], index: 11, kind: input, shape index: {}]   ;;  %s2153_s12 = inlined_call_operand.vmem [shape: bf16[128,32], index: 12, kind: input, shape index: {}]   ;;  %s2154_s13 = inlined_call_operand.vmem [shape: f32[1,32], index: 13, kind: input, shape index: {}]   ;;  %s2155_s14 = inlined_call_operand.vmem [shape: f32[2,8,32], index: 14, kind: output, shape index: {}, may-alias: {0,14}]  }
   0x1 LB: > { %s1628_s30 = sadd.s32 4294967295, %s1821_s29   ;;  %p1632_p0 = scmp.ge.s32.totalorder %s1821_s29, 1  ;;  %s1821_s29 = sphi %s1907_s29, %s24_s29  }
   0x2   : > { %p411_p1 = scmp.lt.s32.totalorder %s1821_s29, 3 }
   0x4   : > { %p412_p2 = pnand %p1632_p0, %p411_p1 }
   0x5   : > { %p455_p3 = scmp.lt.s32.totalorder (!%p412_p2), %s1628_s30, 1  ;;  %s1825_s16 = smov (!%p412_p2), 112  }
   0x6   : > { %415 = sbr.rel (%p412_p2) target bundleno = 2587 (0xa1b), region = 76  ;;  %s1826_s17 = smov (!%p412_p2), 96  }
   0x7   : > { %s1829_s20 = smov (!%p412_p2), 64   ;;  %s1830_s25 = smov (!%p412_p2), 16  }
   0xb   : > { %s2157_s30 = smov (!%p455_p3, %s1628_s30), 1  ;;  %vm467_vm0 = vcmask 261120   ;;  %v1785_v7 = vld [vmem:[%s2145_s4 + $0x8] sm:$0xff]   ;;  %v1823_v8 = vmov 0.0   ;;  %vm1824_vm1 = vmmov 0   ;;  %v1786_v9 = vld [vmem:[%s2145_s4] sm:$0xff]   ;;  %v572_v31 = vlaneseq }
   0xc   : > { %s1633_s15 = sshll.u32 %s2157_s30, 3  ;;  %1700 = vmatprep.subr.bf16.mxu0 %v1823_v8  ;;  %1704 = vmatprep.mubr.msk.bf16.mxu0 %vm1824_vm1, %v1823_v8  ;;  %v1635_v14 = vld [vmem:[%s2143_s2] ss:$0 sm:$0xff]  ;;  %v1827_v29 = vmov 1983009808   ;;  %vm938_vm2 = vcmask 130048  }
   0xd   : > { %s458_s18 = scalar_lea.vmem %s2141_s0, %s1633_s15  ;;  %1701 = vmatpush3.bf16.msra.mxu0 %v1785_v7  ;;  %1720 = vmatprep.subr.bf16.mxu1 %v1823_v8  ;;  %v1636_v16 = vld [vmem:[%s2144_s3] ss:$0 sm:$0xff]  ;;  %v570_v30 = vunpack.c.l.s4 %v1827_v29  ;;  %v573_v34 = vshrl.u32 %v572_v31, 7  ;;  %v1828_v38 = vmov 1934713408   ;;  %vm1031_vm3 = vcmask 64512   ;;  %s462_s19 = scalar_lea.vmem %s2155_s14, %s1633_s15 }
   0xe   : > { %v1923_v0 = vld [vmem:[%s458_s18] sm:$0xff]  ;;  %1702 = vmatprep.subr.bf16.mxu0 %v1823_v8  ;;  %1722 = vmatprep.mubr.msk.bf16.mxu1 %vm1824_vm1, %v1823_v8  ;;  %v601_v39 = vunpack.c.l.s4 %v1828_v38  ;;  %vm1059_vm4 = vcmask 1043456  }
   0xf   : > { %v468_v1 = vsel %vm467_vm0, %v1923_v0, 0.0  ;;  %v1637_v20 = vld [vmem:[%s2146_s5] ss:$0 sm:$0xff]  ;;  %v571_v33 = vunpack.c.0.s8 %v570_v30 }
  0x10   : > { %469 = vadd.xlane.f32.xlu0 %v468_v1  ;;  %v602_v41 = vunpack.c.0.s8 %v601_v39 }
  0x11   : > { %1703 = vmatpush3.bf16.msra.mxu0 %v1786_v9  ;;  %v1965_v37 = vsub.s32 %v571_v33, %v573_v34 }
  0x12   : > { %1708 = vmatprep.subr.bf16.mxu0 %v1823_v8  ;;  %v1972_v48 = vsub.s32 %v602_v41, %v573_v34 }
  0x99   : > { %v470_v2 = vpop.xlane.xlu0 %469 }
  0x9a   : > { %v472_v3 = vmul.f32 0.03125, %v470_v2 }
  0x9c   : > { %v473_v4 = vsub.f32 %v1923_v0, %v472_v3 }
  0x9e   : > { %v474_v5 = vmul.f32 %v473_v4, %v473_v4 }
  0xa0   : > { %v475_v6 = vsel %vm467_vm0, %v474_v5, 0.0 }
  0xa1   : > { %476 = vadd.xlane.f32.xlu0 %v475_v6 }
 0x12a   : > { %v477_v10 = vpop.xlane.xlu0 %476 }
 0x12b   : > { %v478_v11 = vmul.f32 0.03125, %v477_v10 }
 0x12d   : > { %v479_v12 = vadd.f32 1e-05, %v478_v11 }
 0x12f   : > { %1799 = vrsqrt.f32 %v479_v12 }
 0x13c   : > { %v1800_v13 = vpop.eup %1799 }
 0x13d   : > { %v481_v15 = vmul.f32 %v1800_v13, %v473_v4 }
 0x13f   : > { %v488_v17 = vmul.f32 %v1635_v14, %v481_v15 }
 0x141   : > { %v495_v18 = vadd.f32 %v1636_v16, %v488_v17 }
 0x143   : > { %v496_v19 = vpack.c.bf16 %v495_v18, %v495_v18 }
 0x145   : > { %1705 = vmatmul.mubr.msk.bf16.vlgmr.msra.gmra.mxu0 %vm467_vm0, %v496_v19 }
 0x146   : > { %1710 = vmatprep.mubr.msk.bf16.mxu0 %vm1824_vm1, %v1823_v8 }
 0x205   : > { %v557_v21 = vpop.f32.mrf.mxu0 }
 0x206   : > { %v1955_v22 = vadd.f32 %v1637_v20, %v557_v21 }
 0x207   : > { %v1706_v23 = vpop.f32.mrf.mxu0 }
 0x208   : > { %687 = vrot.lane.b32.xlu1 %v1955_v22, %s1825_s16  ;;  %v563_v26 = vmul.f32 0.25, %v1955_v22 }
 0x209   : > { %v560_v24 = vpop.f32.mrf.mxu0 }
 0x20a   : > { %v568_v36 = vcombine.high %v563_v26, %v1823_v8  ;;  %v575_v44 = vrot.slane %v563_v26, %v1965_v37 }
 0x20b   : > { %v1707_v25 = vpop.f32.mrf.mxu0 }
 0x20c   : > { %689 = vrot.lane.b32.xlu1 %v1955_v22, %s1826_s17  ;;  %v582_v42 = vrot.slane %v568_v36, %v1965_v37 }
 0x210   : > { %565 = vrot.lane.b32.xlu1 %v563_v26, %s1825_s16 }
 0x27a   : > { %v1960_v27 = vpop.permute.xlu1 %687 }
 0x27b   : > { %691 = vrot.lane.b32.xlu0 %v1960_v27, %s1826_s17 }
 0x27e   : > { %v690_v28 = vpop.permute.xlu1 %689 }
 0x27f   : > { %v695_v47 = vcombine.high %v690_v28, %v1823_v8  ;;  %v702_v52 = vrot.slane %v690_v28, %v1965_v37 }
 0x281   : > { %v709_v57 = vrot.slane %v695_v47, %v1965_v37 }
 0x282   : > { %v566_v32 = vpop.permute.xlu1 %565 }
 0x283   : > { %v583_v35 = vcombine.high %v566_v32, %v1823_v8  ;;  %v590_v43 = vrot.slane %v566_v32, %v1965_v37 }
 0x285   : > { %v597_v40 = vrot.slane %v583_v35, %v1965_v37  ;;  %v598_v49 = vcombine.low %v575_v44, %v590_v43  ;;  %v599_v50 = vcombine.high %v575_v44, %v590_v43  ;;  %v937_v44 = vld [vmem:[%s2142_s1] sm:$0xff] }
 0x287   : > { %v614_v45 = vcombine.low %v582_v42, %v597_v40  ;;  %v615_v46 = vcombine.high %v582_v42, %v597_v40  ;;  %v606_v61 = vrot.slane %v598_v49, %v1972_v48  ;;  %v613_v62 = vrot.slane %v599_v50, %v1972_v48 }
 0x289   : > { %v622_v55 = vrot.slane %v614_v45, %v1972_v48  ;;  %v629_v56 = vrot.slane %v615_v46, %v1972_v48  ;;  %v634_v11 = vcombine.low %v606_v61, %v613_v62  ;;  %v1641_v12 = vcombine.high %v606_v61, %v613_v62 }
 0x28b   : > { %v650_v4 = vcombine.low %v622_v55, %v629_v56  ;;  %v1642_v5 = vcombine.high %v622_v55, %v629_v56  ;;  %v641_v23 = vrot.slane %v634_v11, %v1965_v37  ;;  %v649_v24 = vrot.slane %v1641_v12, %v1965_v37 }
 0x28d   : > { %v657_v17 = vrot.slane %v650_v4, %v1965_v37  ;;  %v665_v18 = vrot.slane %v1642_v5, %v1965_v37  ;;  %v666_v30 = vcombine.low %v641_v23, %v649_v24 }
 0x28f   : > { %v674_v26 = vcombine.low %v657_v17, %v665_v18  ;;  %v673_v34 = vrot.slane %v666_v30, %v1972_v48 }
 0x291   : > { %v681_v33 = vrot.slane %v674_v26, %v1972_v48 }
 0x293   : > { %v682_v38 = vcombine.low %v673_v34, %v681_v33  ;;  %v683_v42 = vcombine.high %v673_v34, %v681_v33 }
 0x295   : > { %v684_v40 = vpack.c.bf16 %v682_v38, %v682_v38  ;;  %v685_v43 = vpack.c.bf16 %v683_v42, %v683_v42 }
 0x2ed   : > { %v692_v51 = vpop.permute.xlu0 %691 }
 0x2ee   : > { %v710_v53 = vcombine.high %v692_v51, %v1823_v8  ;;  %v717_v54 = vrot.slane %v692_v51, %v1965_v37 }
 0x2f0   : > { %v724_v58 = vrot.slane %v710_v53, %v1965_v37  ;;  %v725_v59 = vcombine.low %v702_v52, %v717_v54  ;;  %v726_v60 = vcombine.high %v702_v52, %v717_v54 }
 0x2f2   : > { %v733_v63 = vrot.slane %v725_v59, %v1972_v48  ;;  %v740_v1 = vrot.slane %v726_v60, %v1972_v48  ;;  %v741_v2 = vcombine.low %v709_v57, %v724_v58  ;;  %v742_v3 = vcombine.high %v709_v57, %v724_v58 }
 0x2f4   : > { %v749_v6 = vrot.slane %v741_v2, %v1972_v48  ;;  %v756_v7 = vrot.slane %v742_v3, %v1972_v48  ;;  %v761_v9 = vcombine.low %v733_v63, %v740_v1  ;;  %v1643_v10 = vcombine.high %v733_v63, %v740_v1 }
 0x2f6   : > { %v768_v13 = vrot.slane %v761_v9, %v1965_v37  ;;  %v776_v14 = vrot.slane %v1643_v10, %v1965_v37  ;;  %v777_v15 = vcombine.low %v749_v6, %v756_v7  ;;  %v1644_v16 = vcombine.high %v749_v6, %v756_v7 }
 0x2f8   : > { %v784_v19 = vrot.slane %v777_v15, %v1965_v37  ;;  %v792_v20 = vrot.slane %v1644_v16, %v1965_v37  ;;  %v793_v21 = vcombine.low %v768_v13, %v776_v14 }
 0x2fa   : > { %v801_v25 = vcombine.low %v784_v19, %v792_v20  ;;  %v800_v28 = vrot.slane %v793_v21, %v1972_v48 }
 0x2fc   : > { %v808_v29 = vrot.slane %v801_v25, %v1972_v48 }
 0x2fe   : > { %v809_v31 = vcombine.low %v800_v28, %v808_v29  ;;  %v810_v36 = vcombine.high %v800_v28, %v808_v29 }
 0x300   : > { %v811_v32 = vpack.c.bf16 %v809_v31, %v809_v31  ;;  %v812_v39 = vpack.c.bf16 %v810_v36, %v810_v36 }
 0x302   : > { %v943_v35 = vsel %vm938_vm2, %v811_v32, 0  ;;  %v989_v41 = vsel %vm938_vm2, %v812_v39, 0 }
 0x303   : > { %1709 = vmatpush3.bf16.xpose.msra.mxu0 %v943_v35 }
 0x304   : > { %1714 = vmatprep.subr.bf16.mxu0 %v1823_v8 }
 0x30a   : > { %1711 = vmatmul.mubr.msk.bf16.vlgmr.msra.gmra.mxu0 %vm938_vm2, %v684_v40 }
 0x30b   : > { %1715 = vmatpush3.bf16.xpose.msra.mxu0 %v989_v41  ;;  %1716 = vmatprep.mubr.msk.bf16.mxu0 %vm1824_vm1, %v1823_v8 }
 0x30c   : > { %1726 = vmatprep.subr.bf16.mxu0 %v1823_v8 }
 0x312   : > { %1717 = vmatmul.mubr.msk.bf16.vlgmr.msra.gmra.mxu0 %vm938_vm2, %v685_v43 }
 0x313   : > { %1728 = vmatprep.mubr.msk.bf16.mxu0 %vm1824_vm1, %v1823_v8 }
 0x3ca   : > { %v979_v45 = vpop.f32.mrf.mxu0 }
 0x3cb   : > { %v980_v46 = vadd.f32 %v979_v45, %v937_v44 }
 0x3cc   : > { %v1712_v47 = vpop.f32.mrf.mxu0 }
 0x3cd   : > { %v1032_v49 = vsel %vm1031_vm3, %v980_v46, -inf }
 0x3ce   : > { %1033 = vmax.xlane.f32.xlu1 %v1032_v49  ;;  %v982_v50 = vpop.f32.mrf.mxu0 }
 0x3cf   : > { %v1787_v50 = vld [vmem:[%s2147_s6 + $0x8] sm:$0xff]  }
 0x3d0   : > { %v1713_v51 = vpop.f32.mrf.mxu0 }
 0x3d2   : > { %v1025_v52 = vpop.f32.mrf.mxu0 }
 0x3d3   : > { %v1026_v53 = vadd.f32 %v1025_v52, %v937_v44 }
 0x3d4   : > { %v1718_v54 = vpop.f32.mrf.mxu0 }
 0x3d5   : > { %v1035_v55 = vsel %vm1031_vm3, %v1026_v53, -inf }
 0x3d6   : > { %1036 = vmax.xlane.f32.xlu0 %v1035_v55  ;;  %v1028_v56 = vpop.f32.mrf.mxu0 }
 0x3d8   : > { %v1719_v57 = vpop.f32.mrf.mxu0 }
 0x3ec   : > { %815 = vrot.lane.b32.xlu0 %v1960_v27, %s1829_s20 }
 0x457   : > { %v1034_v58 = vpop.xlane.xlu1 %1033 }
 0x458   : > { %v1038_v59 = vsub.f32 %v980_v46, %v1034_v58 }
 0x45a   : > { %v1040_v60 = vmul.f32 1.442695, %v1038_v59 }
 0x45c   : > { %1801 = vpow2.f32 %v1040_v60 }
 0x45f   : > { %v1037_v61 = vpop.xlane.xlu0 %1036 }
 0x460   : > { %v1039_v62 = vsub.f32 %v1026_v53, %v1037_v61 }
 0x462   : > { %v1042_v63 = vmul.f32 1.442695, %v1039_v62 }
 0x463   : > { %v816_v27 = vpop.permute.xlu0 %815 }
 0x464   : > { %1803 = vpow2.f32 %v1042_v63  ;;  %v834_v7 = vcombine.high %v816_v27, %v1823_v8  ;;  %v841_v10 = vrot.slane %v816_v27, %v1965_v37  ;;  %v1788_v27 = vld [vmem:[%s2147_s6] sm:$0xff]  }
 0x466   : > { %v848_v13 = vrot.slane %v834_v7, %v1965_v37 }
 0x469   : > { %v1802_v1 = vpop.eup %1801 }
 0x46a   : > { %v1044_v2 = vsel %vm1031_vm3, %v1802_v1, 0.0 }
 0x46b   : > { %1045 = vadd.xlane.f32.xlu1 %v1044_v2 }
 0x471   : > { %v1804_v3 = vpop.eup %1803 }
 0x472   : > { %v1047_v4 = vsel %vm1031_vm3, %v1804_v3, 0.0 }
 0x473   : > { %1048 = vadd.xlane.f32.xlu1 %v1047_v4 }
 0x484   : > { %813 = vrot.lane.b32.xlu1 %v1955_v22, %s1829_s20 }
 0x4f4   : > { %v1046_v5 = vpop.xlane.xlu1 %1045 }
 0x4f5   : > { %1805 = vrcp.f32 %v1046_v5 }
 0x4fc   : > { %v1049_v6 = vpop.xlane.xlu1 %1048 }
 0x4fd   : > { %1807 = vrcp.f32 %v1049_v6 }
 0x500   : > { %v814_v9 = vpop.permute.xlu1 %813 }
 0x501   : > { %v819_v11 = vcombine.high %v814_v9, %v1823_v8  ;;  %v826_v12 = vrot.slane %v814_v9, %v1965_v37 }
 0x502   : > { %v1806_v34 = vpop.eup %1805 }
 0x503   : > { %v833_v14 = vrot.slane %v819_v11, %v1965_v37  ;;  %v849_v15 = vcombine.low %v826_v12, %v841_v10  ;;  %v850_v22 = vcombine.high %v826_v12, %v841_v10  ;;  %v1052_v43 = vmul.f32 %v1806_v34, %v1802_v1 }
 0x505   : > { %v857_v16 = vrot.slane %v849_v15, %v1972_v48  ;;  %v864_v17 = vrot.slane %v850_v22, %v1972_v48  ;;  %v865_v18 = vcombine.low %v833_v14, %v848_v13  ;;  %v866_v19 = vcombine.high %v833_v14, %v848_v13 }
 0x506   : > { %v1054_v47 = vpack.c.bf16 %v1052_v43, %v1052_v43 }
 0x507   : > { %v873_v20 = vrot.slane %v865_v18, %v1972_v48  ;;  %v880_v21 = vrot.slane %v866_v19, %v1972_v48  ;;  %v885_v23 = vcombine.low %v857_v16, %v864_v17  ;;  %v1645_v24 = vcombine.high %v857_v16, %v864_v17 }
 0x509   : > { %v901_v25 = vcombine.low %v873_v20, %v880_v21  ;;  %v1646_v26 = vcombine.high %v873_v20, %v880_v21  ;;  %v892_v28 = vrot.slane %v885_v23, %v1965_v37  ;;  %v900_v29 = vrot.slane %v1645_v24, %v1965_v37 }
 0x50a   : > { %v1808_v38 = vpop.eup %1807 }
 0x50b   : > { %v908_v30 = vrot.slane %v901_v25, %v1965_v37  ;;  %v916_v31 = vrot.slane %v1646_v26, %v1965_v37  ;;  %v917_v32 = vcombine.low %v892_v28, %v900_v29  ;;  %v1053_v44 = vmul.f32 %v1808_v38, %v1804_v3 }
 0x50d   : > { %v925_v33 = vcombine.low %v908_v30, %v916_v31  ;;  %v924_v35 = vrot.slane %v917_v32, %v1972_v48  ;;  %v1055_v49 = vpack.c.bf16 %v1053_v44, %v1053_v44 }
 0x50f   : > { %v932_v36 = vrot.slane %v925_v33, %v1972_v48 }
 0x511   : > { %v933_v39 = vcombine.low %v924_v35, %v932_v36  ;;  %v934_v40 = vcombine.high %v924_v35, %v932_v36 }
 0x513   : > { %v935_v41 = vpack.c.bf16 %v933_v39, %v933_v39  ;;  %v936_v42 = vpack.c.bf16 %v934_v40, %v934_v40 }
 0x515   : > { %v1061_v45 = vsel %vm1059_vm4, %v935_v41, 0  ;;  %v1107_v46 = vsel %vm1059_vm4, %v936_v42, 0  ;;  %v1789_v41 = vld [vmem:[%s2151_s10 + $0x8] sm:$0xff]  }
 0x516   : > { %1721 = vmatpush3.bf16.msra.mxu1 %v1061_v45  ;;  %1727 = vmatpush3.bf16.msra.mxu0 %v1107_v46  ;;  %v1657_v46 = vld [vmem:[%s2149_s8] ss:$0 sm:$0xff] }
 0x517   : > { %1732 = vmatprep.subr.bf16.mxu1 %v1823_v8  ;;  %1740 = vmatprep.subr.bf16.mxu0 %v1823_v8 }
 0x519   : > { %1723 = vmatmul.mubr.msk.bf16.vlgmr.msra.gmra.mxu1 %vm1031_vm3, %v1054_v47  ;;  %1729 = vmatmul.mubr.msk.bf16.vlgmr.msra.gmra.mxu0 %vm1031_vm3, %v1055_v49  ;;  %v1658_v49 = vld [vmem:[%s2150_s9] ss:$0 sm:$0xff] }
 0x51a   : > { %1736 = vmatprep.mubr.msk.bf16.mxu1 %vm1824_vm1, %v1823_v8  ;;  %1744 = vmatprep.mubr.msk.bf16.mxu0 %vm1824_vm1, %v1823_v8 }
 0x51b   : > { %1733 = vmatpush3.bf16.msra.mxu1 %v1787_v50  ;;  %1741 = vmatpush3.bf16.msra.mxu0 %v1789_v41 }
 0x51c   : > { %1734 = vmatprep.subr.bf16.mxu1 %v1823_v8  ;;  %1742 = vmatprep.subr.bf16.mxu0 %v1823_v8 }
 0x51f   : > { %1735 = vmatpush3.bf16.msra.mxu1 %v1788_v27 }
 0x520   : > { %1748 = vmatprep.subr.bf16.mxu1 %v1823_v8 }
 0x5d9   : > { %v1097_v51 = vpop.f32.mrf.mxu1  ;;  %v1143_v52 = vpop.f32.mrf.mxu0 }
 0x5da   : > { %v1149_v53 = vcombine.high %v1097_v51, %v1823_v8  ;;  %v1156_v54 = vrot.slane %v1097_v51, %v1965_v37  ;;  %v1164_v55 = vcombine.high %v1143_v52, %v1823_v8  ;;  %v1171_v56 = vrot.slane %v1143_v52, %v1965_v37 }
 0x5db   : > { %v1724_v57 = vpop.f32.mrf.mxu1  ;;  %v1730_v58 = vpop.f32.mrf.mxu0 }
 0x5dc   : > { %v1163_v59 = vrot.slane %v1149_v53, %v1965_v37  ;;  %v1178_v60 = vrot.slane %v1164_v55, %v1965_v37  ;;  %v1179_v61 = vcombine.low %v1156_v54, %v1171_v56  ;;  %v1180_v62 = vcombine.high %v1156_v54, %v1171_v56  ;;  %v1791_v53 = vld [vmem:[%s2153_s12 + $0x38] sm:$0xff]   ;;  %v1792_v54 = vld [vmem:[%s2153_s12 + $0x30] sm:$0xff]   ;;  %v1793_v55 = vld [vmem:[%s2153_s12 + $0x28] sm:$0xff]  }
 0x5dd   : > { %v1100_v63 = vpop.f32.mrf.mxu1  ;;  %v1146_v1 = vpop.f32.mrf.mxu0  ;;  %v1794_v56 = vld [vmem:[%s2153_s12 + $0x20] sm:$0xff]   ;;  %v1795_v57 = vld [vmem:[%s2153_s12 + $0x18] sm:$0xff]   ;;  %v1796_v58 = vld [vmem:[%s2153_s12 + $0x10] sm:$0xff]  }
 0x5de   : > { %v1187_v2 = vrot.slane %v1179_v61, %v1972_v48  ;;  %v1194_v3 = vrot.slane %v1180_v62, %v1972_v48  ;;  %v1195_v4 = vcombine.low %v1163_v59, %v1178_v60  ;;  %v1196_v5 = vcombine.high %v1163_v59, %v1178_v60  ;;  %v1797_v59 = vld [vmem:[%s2153_s12 + $0x8] sm:$0xff]   ;;  %v1798_v60 = vld [vmem:[%s2153_s12] sm:$0xff]  }
 0x5df   : > { %v1725_v6 = vpop.f32.mrf.mxu1  ;;  %v1731_v7 = vpop.f32.mrf.mxu0  ;;  %v1659_v61 = vld [vmem:[%s2152_s11] ss:$0 sm:$0xff] }
 0x5e0   : > { %v1203_v9 = vrot.slane %v1195_v4, %v1972_v48  ;;  %v1210_v10 = vrot.slane %v1196_v5, %v1972_v48  ;;  %v1215_v11 = vcombine.low %v1187_v2, %v1194_v3  ;;  %v1651_v12 = vcombine.high %v1187_v2, %v1194_v3 }
 0x5e2   : > { %v1222_v13 = vrot.slane %v1215_v11, %v1965_v37  ;;  %v1230_v14 = vrot.slane %v1651_v12, %v1965_v37  ;;  %v1231_v15 = vcombine.low %v1203_v9, %v1210_v10  ;;  %v1652_v22 = vcombine.high %v1203_v9, %v1210_v10 }
 0x5e4   : > { %v1238_v16 = vrot.slane %v1231_v15, %v1965_v37  ;;  %v1246_v17 = vrot.slane %v1652_v22, %v1965_v37  ;;  %v1247_v18 = vcombine.low %v1222_v13, %v1230_v14  ;;  %v1653_v37 = vld [vmem:[%s2148_s7] ss:$0 sm:$0xff] }
 0x5e6   : > { %v1255_v19 = vcombine.low %v1238_v16, %v1246_v17  ;;  %v1254_v20 = vrot.slane %v1247_v18, %v1972_v48 }
 0x5e8   : > { %v1262_v21 = vrot.slane %v1255_v19, %v1972_v48 }
 0x5ea   : > { %v1264_v23 = vcombine.high %v1254_v20, %v1262_v21  ;;  %v1263_v24 = vcombine.low %v1254_v20, %v1262_v21 }
 0x5ec   : > { %1266 = vrot.lane.b32.xlu1 %v1264_v23, %s1830_s25  ;;  %v1831_v23 = vmov -1.0  }
 0x65e   : > { %v1267_v25 = vpop.permute.xlu1 %1266 }
 0x65f   : > { %v1269_v26 = vsel %vm938_vm2, %v1263_v24, %v1267_v25 }
 0x660   : > { %v1270_v28 = vpack.c.bf16 %v1269_v26, %v1269_v26 }
 0x662   : > { %1737 = vmatmul.mubr.msk.bf16.vlgmr.msra.gmra.mxu1 %vm467_vm0, %v1270_v28 }
 0x663   : > { %1764 = vmatprep.mubr.msk.bf16.mxu1 %vm1824_vm1, %v1823_v8  ;;  %1749 = vmatpush3.bf16.msra.mxu1 %v1791_v53 }
 0x664   : > { %1750 = vmatprep.subr.bf16.mxu1 %v1823_v8 }
 0x667   : > { %1751 = vmatpush3.bf16.msra.mxu1 %v1792_v54 }
 0x668   : > { %1752 = vmatprep.subr.bf16.mxu1 %v1823_v8 }
 0x66b   : > { %1753 = vmatpush3.bf16.msra.mxu1 %v1793_v55 }
 0x66c   : > { %1754 = vmatprep.subr.bf16.mxu1 %v1823_v8 }
 0x66f   : > { %1755 = vmatpush3.bf16.msra.mxu1 %v1794_v56 }
 0x670   : > { %1756 = vmatprep.subr.bf16.mxu1 %v1823_v8 }
 0x673   : > { %1757 = vmatpush3.bf16.msra.mxu1 %v1795_v57 }
 0x674   : > { %1758 = vmatprep.subr.bf16.mxu1 %v1823_v8 }
 0x677   : > { %1759 = vmatpush3.bf16.msra.mxu1 %v1796_v58 }
 0x678   : > { %1760 = vmatprep.subr.bf16.mxu1 %v1823_v8 }
 0x67b   : > { %1761 = vmatpush3.bf16.msra.mxu1 %v1797_v59 }
 0x67c   : > { %1762 = vmatprep.subr.bf16.mxu1 %v1823_v8 }
 0x67f   : > { %1763 = vmatpush3.bf16.msra.mxu1 %v1798_v60 }
 0x722   : > { %v1331_v29 = vpop.f32.mrf.mxu1 }
 0x723   : > { %v1332_v30 = vadd.f32 %v1653_v37, %v1331_v29 }
 0x724   : > { %v1738_v48 = vpop.f32.mrf.mxu1 }
 0x725   : > { %v2074_v31 = vadd.f32 %v1332_v30, %v1923_v0  ;;  %v1790_v0 = vld [vmem:[%s2151_s10] sm:$0xff]  }
 0x726   : > { %v1334_v32 = vpop.f32.mrf.mxu1  ;;  %1743 = vmatpush3.bf16.msra.mxu0 %v1790_v0  ;;  %v1663_v30 = vld [vmem:[%s2154_s13] ss:$0 sm:$0xff] }
 0x727   : > { %v1340_v33 = vsel %vm467_vm0, %v2074_v31, 0.0 }
 0x728   : > { %1341 = vadd.xlane.f32.xlu1 %v1340_v33  ;;  %v1739_v34 = vpop.f32.mrf.mxu1 }
 0x7b1   : > { %v1342_v35 = vpop.xlane.xlu1 %1341 }
 0x7b2   : > { %v1343_v36 = vmul.f32 0.03125, %v1342_v35 }
 0x7b4   : > { %v1344_v38 = vsub.f32 %v2074_v31, %v1343_v36 }
 0x7b6   : > { %v1345_v39 = vmul.f32 %v1344_v38, %v1344_v38 }
 0x7b8   : > { %v1346_v40 = vsel %vm467_vm0, %v1345_v39, 0.0 }
 0x7b9   : > { %1347 = vadd.xlane.f32.xlu0 %v1346_v40 }
 0x842   : > { %v1348_v42 = vpop.xlane.xlu0 %1347 }
 0x843   : > { %v1349_v43 = vmul.f32 0.03125, %v1348_v42 }
 0x845   : > { %v1350_v44 = vadd.f32 1e-05, %v1349_v43 }
 0x847   : > { %1809 = vrsqrt.f32 %v1350_v44 }
 0x854   : > { %v1810_v45 = vpop.eup %1809 }
 0x855   : > { %v1352_v47 = vmul.f32 %v1810_v45, %v1344_v38 }
 0x857   : > { %v1359_v50 = vmul.f32 %v1657_v46, %v1352_v47 }
 0x859   : > { %v1366_v51 = vadd.f32 %v1658_v49, %v1359_v50 }
 0x85b   : > { %v1367_v52 = vpack.c.bf16 %v1366_v51, %v1366_v51 }
 0x85d   : > { %1745 = vmatmul.mubr.msk.bf16.vlgmr.msra.gmra.mxu0 %vm467_vm0, %v1367_v52 }
 0x91d   : > { %v1428_v62 = vpop.f32.mrf.mxu0 }
 0x91e   : > { %v1429_v63 = vadd.f32 %v1659_v61, %v1428_v62 }
 0x91f   : > { %v1746_v1 = vpop.f32.mrf.mxu0 }
 0x920   : > { %v1435_v2 = vmul.f32 0.70710677, %v1429_v63  ;;  %v1434_v26 = vmul.f32 0.5, %v1429_v63 }
 0x921   : > { %v1431_v3 = vpop.f32.mrf.mxu0 }
 0x922   : > { %v1438_v4 = vand.u32 2147483647, %v1435_v2  ;;  %vm1436_vm5 = vcmp.ge.f32.partialorder %v1435_v2, 0.0 }
 0x923   : > { %v1747_v5 = vpop.f32.mrf.mxu0  ;;  %v1437_v24 = vsel %vm1436_vm5, 1.0, %v1831_v23 }
 0x924   : > { %v1439_v27 = vmul.f32 0.3275911, %v1438_v4  ;;  %v1452_v8 = vsub.f32 0.0, %v1438_v4 }
 0x926   : > { %v1440_v6 = vadd.f32 1.0, %v1439_v27  ;;  %v1453_v7 = vmul.f32 %v1452_v8, %v1438_v4 }
 0x928   : > { %1811 = vrcp.f32 %v1440_v6  ;;  %v1454_v11 = vmul.f32 1.442695, %v1453_v7 }
 0x92a   : > { %1813 = vpow2.f32 %v1454_v11 }
 0x935   : > { %v1812_v9 = vpop.eup %1811 }
 0x936   : > { %v1443_v10 = vmul.f32 1.0614054, %v1812_v9 }
 0x937   : > { %v1814_v19 = vpop.eup %1813 }
 0x938   : > { %v1444_v12 = vadd.f32 -1.4531521, %v1443_v10 }
 0x93a   : > { %v1445_v13 = vmul.f32 %v1812_v9, %v1444_v12 }
 0x93c   : > { %v1446_v14 = vadd.f32 1.4214138, %v1445_v13 }
 0x93e   : > { %v1447_v15 = vmul.f32 %v1812_v9, %v1446_v14 }
 0x940   : > { %v1448_v22 = vadd.f32 -0.28449672, %v1447_v15 }
 0x942   : > { %v1449_v16 = vmul.f32 %v1812_v9, %v1448_v22 }
 0x944   : > { %v1450_v17 = vadd.f32 0.2548296, %v1449_v16 }
 0x946   : > { %v1451_v18 = vmul.f32 %v1812_v9, %v1450_v17 }
 0x948   : > { %v1456_v20 = vmul.f32 %v1814_v19, %v1451_v18 }
 0x94a   : > { %v1457_v21 = vsub.f32 1.0, %v1456_v20 }
 0x94c   : > { %v1458_v25 = vmul.f32 %v1457_v21, %v1437_v24 }
 0x94e   : > { %v1459_v28 = vadd.f32 1.0, %v1458_v25 }
 0x950   : > { %v1460_v37 = vmul.f32 %v1459_v28, %v1434_v26 }
 0x952   : > { %v1461_v29 = vpack.c.bf16 %v1460_v37, %v1460_v37 }
 0x954   : > { %1765 = vmatmul.mubr.bf16.vlgmr.msra.gmra.mxu1 %v1461_v29 }
 0xa14   : > { %v1567_v48 = vpop.f32.mrf.mxu1 }
 0xa15   : > { %v1568_v32 = vadd.f32 %v1663_v30, %v1567_v48 }
 0xa16   : > { %v1766_v33 = vpop.f32.mrf.mxu1 }
 0xa17   : > { %v1573_v34 = vadd.f32 %v1568_v32, %v2074_v31 }
 0xa18   : > { %v1570_v35 = vpop.f32.mrf.mxu1 }
 0xa19   : > { %1574 = vst.msk [vmem:[%s462_s19] sm:$0xff] %vm467_vm0, %v1573_v34 }
 0xa1a   : > { %v1767_v36 = vpop.f32.mrf.mxu1 }
 0xa1b PF: > { %s24_s29 = sadd.s32 1, %s1821_s29  }
 0xa1c   : > { %p21_p4 = scmp.ge.s32.totalorder %s24_s29, 4  }
 0xa1e   :  { %23 = sbr.rel (!%p21_p4) target bundleno = 1 (0x1), region = 106 }

</bundles_post_ra>
